<compile_context>
chip_gen: v7x
topology: tpu7x:2x2x1
jax: 0.10.0
libtpu: 0.0.40
codegen_flags: <defaults>
</compile_context>

<pallas_src>
import functools

import jax
import jax.numpy as jnp
from jax.experimental import pallas as pl
from jax.experimental.pallas import tpu as pltpu

LANE = 128


def _pad_to(n, m=LANE):
    return ((n + m - 1) // m) * m


def _cdiv(a, b):
    return -(-a // b)


# ----------------------------------------------------------------------------
# VMEM budgeting / tile selection
# ----------------------------------------------------------------------------
def _vmem_limit_bytes():
    cap = 64 * 1024 * 1024                  # conservative default (v7x VMEM)
    try:
        cap = pltpu.get_tpu_info().vmem_capacity_bytes
    except Exception:
        pass
    # 3/4 of physical -> ~48 MiB on v7x, ~96 MiB on v5e/v6e; never above 100 MiB.
    return int(min(cap * 3 // 4, 100 * 1024 * 1024))


def _choose_backbone_tiling(batch, num_patches, pd_pad, w_pad, vmem_limit):
    """Pick (images-per-tile, patches-per-chunk) from a VMEM byte budget."""
    weight_bytes = 2 * pd_pad * w_pad * 2 + 2 * w_pad * 4   # dbl-buffered wp + bp
    budget = max(vmem_limit - weight_bytes - (4 << 20), 1 << 20)

    def tile_bytes(tb, pc):
        return (2 * tb * pc * pd_pad * 2      # double-buffered bf16 patch chunk
                + tb * pc * w_pad * 4          # live f32 patch-embed activations
                + tb * w_pad * 4               # pooled f32 accumulator scratch
                + 2 * tb * w_pad * 2)          # double-buffered bf16 pooled output

    pc_cands = [num_patches] + [c for c in (256, 128, 64, 32, 16)
                                if c < num_patches and num_patches % c == 0]
    tb_cands = [batch] + [t for t in (1024, 512, 256, 128, 64, 32, 16)
                          if t < batch]
    for tb in tb_cands:
        for pc in pc_cands:
            if tile_bytes(tb, pc) <= budget:
                return tb, pc
    return (16 if batch > 16 else batch), pc_cands[-1]


def _choose_head_tile(b_pad, w_pad, d_pad, h_pad, z_pad, vmem_limit):
    weight_bytes = 2 * 2 * (w_pad * d_pad + d_pad * h_pad
                            + h_pad * h_pad + h_pad * z_pad)
    budget = max(vmem_limit - weight_bytes - (4 << 20), 1 << 20)

    def tile_bytes(tb):
        return (2 * tb * w_pad * 2     # pooled input (bf16, double-buffered)
                + 4 * tb * h_pad * 4   # h1 in/out (f32, double-buffered)
                + 3 * tb * h_pad * 4   # live f32 intermediates
                + 2 * tb * z_pad * 4)  # z output (f32, double-buffered)

    if tile_bytes(b_pad) <= budget:
        return b_pad
    for tb in (2048, 1024, 512, 256, 128, 64, 32, 16):
        if tb < b_pad and b_pad % tb == 0 and tile_bytes(tb) <= budget:
            return tb
    return b_pad


# ----------------------------------------------------------------------------
# Kernel 1: backbone stand-in (patch embed -> relu -> mean pool), patch-chunked
# ----------------------------------------------------------------------------
def backbone_kernel(patches_ref, wp_ref, bp_ref, pooled_ref, acc_ref,
                    *, inv_num_patches):
    # patches: (TB, PC, PD_pad) bf16   wp: (PD_pad, W_pad) bf16   bp: (1, W_pad) f32
    # pooled:  (TB, W_pad) bf16        acc: (TB, W_pad) f32 scratch
    j = pl.program_id(1)
    tb, pc, pd = patches_ref.shape
    chunk = patches_ref[...].reshape(tb * pc, pd)          # PC % 8 == 0 -> free

    # Tall 2D matmul on the MXU (bf16 operands, f32 accumulation).
    tok = jnp.dot(chunk, wp_ref[...], preferred_element_type=jnp.float32)
    tok = jnp.maximum(tok + bp_ref[...], 0.0)               # stand-in nonlinearity

    # Partial mean-pool over this patch chunk (sublane-axis reduction).
    partial = jnp.sum(tok.reshape(tb, pc, tok.shape[-1]), axis=1)

    @pl.when(j == 0)
    def _():
        acc_ref[...] = jnp.zeros_like(acc_ref)

    acc_ref[...] += partial

    @pl.when(j == pl.num_programs(1) - 1)
    def _():
        pooled_ref[...] = (acc_ref[...] * inv_num_patches).astype(pooled_ref.dtype)


# ----------------------------------------------------------------------------
# Kernel 2: head stage 1 — backbone projection + Linear(input_dim, hidden_dim)
#           + masked accumulation of BatchNorm sum / sum-of-squares
# ----------------------------------------------------------------------------
def head_stats_kernel(pooled_ref, wproj_ref, bproj_ref, w1_ref, b1_ref,
                      h1_ref, stats_ref, *, batch, tile_b):
    # pooled: (TBH, W_pad) bf16  wproj: (W_pad, D_pad) bf16  bproj: (1, D_pad) f32
    # w1: (D_pad, H_pad) bf16    b1: (1, H_pad) f32
    # h1: (TBH, H_pad) f32       stats: (2, H_pad) f32 accumulator (sum, sumsq)
    i = pl.program_id(0)

    feat = jnp.dot(pooled_ref[...], wproj_ref[...],
                   preferred_element_type=jnp.float32) + bproj_ref[...]
    h = jnp.dot(feat.astype(jnp.bfloat16), w1_ref[...],
                preferred_element_type=jnp.float32) + b1_ref[...]
    h1_ref[...] = h

    # Mask out batch-padding rows so full-batch BN statistics are exact.
    rows = i * tile_b + jax.lax.broadcasted_iota(jnp.int32, h.shape, 0)
    m = (rows < batch).astype(jnp.float32)
    hm = h * m
    part = jnp.concatenate(
        [jnp.sum(hm, axis=0, keepdims=True),
         jnp.sum(hm * h, axis=0, keepdims=True)], axis=0)

    @pl.when(i == 0)
    def _():
        stats_ref[...] = jnp.zeros_like(stats_ref)

    stats_ref[...] += part


# ----------------------------------------------------------------------------
# Kernel 3: head stage 2 — BN apply -> ReLU -> Linear -> ReLU -> Linear
#           -> F.normalize(Z, 2)
# ----------------------------------------------------------------------------
def head_apply_kernel(h1_ref, stats_ref, gamma_ref, beta_ref,
                      w2_ref, b2_ref, w3_ref, b3_ref, out_ref, *, inv_batch):
    h = h1_ref[...]                                           # (TBH, H_pad) f32

    # BatchNorm1d (train-mode forward): full-batch biased stats, eps = 1e-5.
    st = stats_ref[...]
    mean = st[0:1, :] * inv_batch
    var = jnp.maximum(st[1:2, :] * inv_batch - mean * mean, 0.0)
    h = (h - mean) * jax.lax.rsqrt(var + 1e-5)
    h = jnp.maximum(h * gamma_ref[...] + beta_ref[...], 0.0)

    # Linear(hidden_dim, hidden_dim) + ReLU
    h = jnp.dot(h.astype(jnp.bfloat16), w2_ref[...],
                preferred_element_type=jnp.float32) + b2_ref[...]
    h = jnp.maximum(h, 0.0)

    # subspace: Linear(hidden_dim, z_dim)
    z = jnp.dot(h.astype(jnp.bfloat16), w3_ref[...],
                preferred_element_type=jnp.float32) + b3_ref[...]

    # F.normalize(Z, 2, dim=1, eps=1e-12) via rsqrt (EUP) + multiply.
    sq = jnp.sum(z * z, axis=1, keepdims=True)
    out_ref[...] = z * jax.lax.rsqrt(jnp.maximum(sq, 1e-24))


# ----------------------------------------------------------------------------
# Wrapper
# ----------------------------------------------------------------------------
def my_clip_forward(x_nchw, params, *, patch, z_dim):
    """x_nchw: (B, C, H, W) float32 images (NCHW, PyTorch convention)."""
    B, C, H, W = x_nchw.shape
    ph = pw = patch
    P = (H // ph) * (W // pw)
    PD = C * ph * pw

    PD_pad, W_pad = params["wp"].shape
    D_pad = params["wproj"].shape[1]
    H_pad = params["w1"].shape[1]
    Z_pad = params["w3"].shape[1]

    vmem_limit = _vmem_limit_bytes()
    TB, PC = _choose_backbone_tiling(B, P, PD_pad, W_pad, vmem_limit)
    nb = _cdiv(B, TB)
    B_pad = nb * TB
    npc = P // PC

    # Glue: NCHW -> (B_pad, P, PD_pad) bf16 patch tensor (pure layout, no compute).
    # TODO(synk): express patch extraction via a block index_map over
    # (B, H/ph, W/pw) so the backbone DMAs patches straight out of the NCHW
    # array instead of paying an extra HBM round trip here.
    xb = x_nchw.astype(jnp.bfloat16)
    patches = (
        xb.reshape(B, C, H // ph, ph, W // pw, pw)
        .transpose(0, 2, 4, 1, 3, 5)
        .reshape(B, P, PD)
    )
    patches = jnp.pad(patches, ((0, B_pad - B), (0, 0), (0, PD_pad - PD)))

    bb_flops = 2 * B_pad * P * PD_pad * W_pad
    bb_bytes = (patches.size * 2 + params["wp"].size * 2
                + W_pad * 4 + B_pad * W_pad * 2)

    pooled = pl.pallas_call(
        functools.partial(backbone_kernel, inv_num_patches=1.0 / P),
        out_shape=jax.ShapeDtypeStruct((B_pad, W_pad), jnp.bfloat16),
        grid=(nb, npc),
        in_specs=[
            pl.BlockSpec((TB, PC, PD_pad), lambda i, j: (i, j, 0)),  # patch chunk
            pl.BlockSpec((PD_pad, W_pad), lambda i, j: (0, 0)),      # wp (resident)
            pl.BlockSpec((1, W_pad), lambda i, j: (0, 0)),           # bp
        ],
        out_specs=pl.BlockSpec((TB, W_pad), lambda i, j: (i, 0)),
        scratch_shapes=[pltpu.VMEM((TB, W_pad), jnp.float32)],
        compiler_params=pltpu.CompilerParams(
            dimension_semantics=("parallel", "arbitrary"),
            vmem_limit_bytes=vmem_limit),
        cost_estimate=pl.CostEstimate(
            flops=bb_flops, transcendentals=0, bytes_accessed=bb_bytes),
    )(patches, params["wp"], params["bp"])

    TBH = _choose_head_tile(B_pad, W_pad, D_pad, H_pad, Z_pad, vmem_limit)
    nh = B_pad // TBH

    h1_flops = 2 * B_pad * (W_pad * D_pad + D_pad * H_pad)
    h1_bytes = (B_pad * W_pad * 2 + params["wproj"].size * 2
                + params["w1"].size * 2 + B_pad * H_pad * 4 + 2 * H_pad * 4)

    h1, stats = pl.pallas_call(
        functools.partial(head_stats_kernel, batch=B, tile_b=TBH),
        out_shape=(jax.ShapeDtypeStruct((B_pad, H_pad), jnp.float32),
                   jax.ShapeDtypeStruct((2, H_pad), jnp.float32)),
        grid=(nh,),
        in_specs=[
            pl.BlockSpec((TBH, W_pad), lambda i: (i, 0)),   # pooled tokens (tiled)
            pl.BlockSpec((W_pad, D_pad), lambda i: (0, 0)),  # wproj (resident)
            pl.BlockSpec((1, D_pad), lambda i: (0, 0)),      # bproj
            pl.BlockSpec((D_pad, H_pad), lambda i: (0, 0)),  # w1 (resident)
            pl.BlockSpec((1, H_pad), lambda i: (0, 0)),      # b1
        ],
        out_specs=(pl.BlockSpec((TBH, H_pad), lambda i: (i, 0)),
                   pl.BlockSpec((2, H_pad), lambda i: (0, 0))),
        compiler_params=pltpu.CompilerParams(
            dimension_semantics=("arbitrary",),
            vmem_limit_bytes=vmem_limit),
        cost_estimate=pl.CostEstimate(
            flops=h1_flops, transcendentals=0, bytes_accessed=h1_bytes),
    )(pooled, params["wproj"], params["bproj"], params["w1"], params["b1"])

    h2_flops = 2 * B_pad * (H_pad * H_pad + H_pad * Z_pad)
    h2_bytes = (B_pad * H_pad * 4 + params["w2"].size * 2 + params["w3"].size * 2
                + B_pad * Z_pad * 4 + 4 * H_pad * 4 + Z_pad * 4)

    z_padded = pl.pallas_call(
        functools.partial(head_apply_kernel, inv_batch=1.0 / B),
        out_shape=jax.ShapeDtypeStruct((B_pad, Z_pad), jnp.float32),
        grid=(nh,),
        in_specs=[
            pl.BlockSpec((TBH, H_pad), lambda i: (i, 0)),    # h1 (tiled)
            pl.BlockSpec((2, H_pad), lambda i: (0, 0)),      # BN sum / sumsq
            pl.BlockSpec((1, H_pad), lambda i: (0, 0)),      # gamma
            pl.BlockSpec((1, H_pad), lambda i: (0, 0)),      # beta
            pl.BlockSpec((H_pad, H_pad), lambda i: (0, 0)),  # w2 (resident)
            pl.BlockSpec((1, H_pad), lambda i: (0, 0)),      # b2
            pl.BlockSpec((H_pad, Z_pad), lambda i: (0, 0)),  # w3 (resident)
            pl.BlockSpec((1, Z_pad), lambda i: (0, 0)),      # b3
        ],
        out_specs=pl.BlockSpec((TBH, Z_pad), lambda i: (i, 0)),
        compiler_params=pltpu.CompilerParams(
            dimension_semantics=("parallel",),
            vmem_limit_bytes=vmem_limit),
        cost_estimate=pl.CostEstimate(
            flops=h2_flops, transcendentals=int(B_pad + 2 * H_pad),
            bytes_accessed=h2_bytes),
    )(h1, stats, params["gamma"], params["beta"],
      params["w2"], params["b2"], params["w3"], params["b3"])

    # Padded Z columns are exactly zero (zero-padded weights/bias), so slicing
    # preserves the unit row norm; padded batch rows are dropped.
    return z_padded[:B, :z_dim]


def init_params(key, *, channels, patch, width, input_dim, hidden_dim, z_dim):
    """Weights zero-padded to 128-lane-aligned shapes; matmul weights in bf16."""
    PD = channels * patch * patch
    PD_p, W_p, D_p, H_p, Z_p = (_pad_to(PD), _pad_to(width), _pad_to(input_dim),
                                _pad_to(hidden_dim), _pad_to(z_dim))
    ks = jax.random.split(key, 8)

    def lin_w(k, fi, fo, fi_p, fo_p):
        s = 1.0 / jnp.sqrt(fi)
        w = jax.random.uniform(k, (fi, fo), jnp.float32, -s, s)
        return (jnp.zeros((fi_p, fo_p), jnp.float32)
                .at[:fi, :fo].set(w).astype(jnp.bfloat16))

    def pad_row(v, n_p):
        return jnp.zeros((1, n_p), jnp.float32).at[:, :v.shape[-1]].set(v)

    return {
        # backbone stand-in
        "wp":    lin_w(ks[0], PD, width, PD_p, W_p),
        "bp":    jnp.zeros((1, W_p), jnp.float32),
        "wproj": lin_w(ks[1], width, input_dim, W_p, D_p),
        "bproj": jnp.zeros((1, D_p), jnp.float32),
        # pre_feature
        "w1":    lin_w(ks[2], input_dim, hidden_dim, D_p, H_p),
        "b1":    pad_row(0.01 * jax.random.normal(ks[3], (1, hidden_dim)), H_p),
        "gamma": jnp.zeros((1, H_p), jnp.float32).at[:, :hidden_dim].set(1.0),
        "beta":  jnp.zeros((1, H_p), jnp.float32),
        "w2":    lin_w(ks[4], hidden_dim, hidden_dim, H_p, H_p),
        "b2":    pad_row(0.01 * jax.random.normal(ks[5], (1, hidden_dim)), H_p),
        # subspace
        "w3":    lin_w(ks[6], hidden_dim, z_dim, H_p, Z_p),
        "b3":    pad_row(0.01 * jax.random.normal(ks[7], (1, z_dim)), Z_p),
    }


if __name__ == "__main__":
    # Small shapes consistent with the module's forward:
    # images (B=2, C=3, H=W=16), patch=4, input_dim=64, hidden=32, z=16.
    B, C, H, W = 2, 3, 16, 16
    PATCH = 4
    WIDTH = 80
    INPUT_DIM, HIDDEN_DIM, Z_DIM = 64, 32, 16

    key = jax.random.PRNGKey(0)
    kx, kp = jax.random.split(key)
    x = jax.random.normal(kx, (B, C, H, W), jnp.float32)
    params = init_params(kp, channels=C, patch=PATCH, width=WIDTH,
                         input_dim=INPUT_DIM, hidden_dim=HIDDEN_DIM, z_dim=Z_DIM)

    z = my_clip_forward(x, params, patch=PATCH, z_dim=Z_DIM)
    z = jax.block_until_ready(z)

    assert z.shape == (B, Z_DIM)
    # rows of Z must be unit L2-norm (F.normalize semantics)
    norms = jnp.linalg.norm(z, axis=1)
    assert bool(jnp.all(jnp.abs(norms - 1.0) < 1e-3))
    print("KERNEL_OK")
</pallas_src>

<mosaic_0001>
module attributes {stable_mosaic.version = 11 : i64} {
  func.func @backbone_kernel(%arg0: i32, %arg1: i32, %arg2: memref<2x16x128xbf16, #tpu.memory_space<vmem>>, %arg3: memref<128x128xbf16, #tpu.memory_space<vmem>>, %arg4: memref<1x128xf32, #tpu.memory_space<vmem>>, %arg5: memref<2x128xbf16, #tpu.memory_space<vmem>>, %arg6: memref<2x128xf32, #tpu.memory_space<vmem>>) attributes {dimension_semantics = [#tpu.dimension_semantics<parallel>, #tpu.dimension_semantics<arbitrary>], iteration_bounds = array<i64: 1, 1>, scalar_prefetch = 0 : i64, scratch_operands = 1 : i64, tpu.core_type = #tpu.core_type<tc>, window_params = [{transform_indices = @transform_0, window_bounds = array<i64: 2, 16, 128>}, {pipeline_mode = #tpu.pipeline_mode<synchronous>, transform_indices = @transform_1, window_bounds = array<i64: 128, 128>}, {pipeline_mode = #tpu.pipeline_mode<synchronous>, transform_indices = @transform_2, window_bounds = array<i64: 1, 128>}, {transform_indices = @transform_3, window_bounds = array<i64: 2, 128>}]} {
    %c0 = arith.constant 0 : index
    %c0_0 = arith.constant 0 : index
    %c0_1 = arith.constant 0 : index
    %0 = vector.load %arg2[%c0, %c0_0, %c0_1] : memref<2x16x128xbf16, #tpu.memory_space<vmem>>, vector<2x16x128xbf16>
    %1 = vector.shape_cast %0 : vector<2x16x128xbf16> to vector<32x128xbf16>
    %c0_2 = arith.constant 0 : index
    %c0_3 = arith.constant 0 : index
    %2 = vector.load %arg3[%c0_2, %c0_3] : memref<128x128xbf16, #tpu.memory_space<vmem>>, vector<128x128xbf16>
    %cst = arith.constant dense<0.000000e+00> : vector<32x128xf32>
    %3 = tpu.matmul %1, %2, %cst {dimension_numbers = #tpu.dot_dimension_numbers<[1], [0], [0], [1], [0, 0, 1, 1], [], []>} : vector<32x128xbf16>, vector<128x128xbf16>, vector<32x128xf32> -> vector<32x128xf32>
    %c0_4 = arith.constant 0 : index
    %c0_5 = arith.constant 0 : index
    %4 = vector.load %arg4[%c0_4, %c0_5] : memref<1x128xf32, #tpu.memory_space<vmem>>, vector<1x128xf32>
    %5 = vector.broadcast %4 : vector<1x128xf32> to vector<32x128xf32>
    %6 = arith.addf %3, %5 : vector<32x128xf32>
    %cst_6 = arith.constant 0.000000e+00 : f32
    %7 = vector.broadcast %cst_6 : f32 to vector<32x128xf32>
    %8 = arith.maximumf %6, %7 : vector<32x128xf32>
    %9 = vector.shape_cast %8 : vector<32x128xf32> to vector<2x16x128xf32>
    %cst_7 = arith.constant dense<0.000000e+00> : vector<2x128xf32>
    %10 = vector.multi_reduction <add>, %9, %cst_7 [1] : vector<2x16x128xf32> to vector<2x128xf32>
    %c0_i32 = arith.constant 0 : i32
    %11 = arith.cmpi eq, %arg1, %c0_i32 : i32
    %12 = arith.extui %11 : i1 to i32
    %c0_i32_8 = arith.constant 0 : i32
    %13 = arith.cmpi ne, %12, %c0_i32_8 : i32
    scf.if %13 {
      %cst_15 = arith.constant 0.000000e+00 : f32
      %20 = vector.broadcast %cst_15 : f32 to vector<2x128xf32>
      %c0_16 = arith.constant 0 : index
      %c0_17 = arith.constant 0 : index
      %21 = vector.load %arg6[%c0_16, %c0_17] : memref<2x128xf32, #tpu.memory_space<vmem>>, vector<2x128xf32>
      tpu.vector_store %arg6[%c0_16, %c0_17], %20 {strides = array<i32>} : memref<2x128xf32, #tpu.memory_space<vmem>>, vector<2x128xf32>,
    } else {
    }
    %c0_9 = arith.constant 0 : index
    %c0_10 = arith.constant 0 : index
    %14 = vector.load %arg6[%c0_9, %c0_10] : memref<2x128xf32, #tpu.memory_space<vmem>>, vector<2x128xf32>
    %15 = arith.addf %14, %10 : vector<2x128xf32>
    %c0_11 = arith.constant 0 : index
    %c0_12 = arith.constant 0 : index
    %16 = vector.load %arg6[%c0_11, %c0_12] : memref<2x128xf32, #tpu.memory_space<vmem>>, vector<2x128xf32>
    tpu.vector_store %arg6[%c0_11, %c0_12], %15 {strides = array<i32>} : memref<2x128xf32, #tpu.memory_space<vmem>>, vector<2x128xf32>,
    %c0_i32_13 = arith.constant 0 : i32
    %17 = arith.cmpi eq, %arg1, %c0_i32_13 : i32
    %18 = arith.extui %17 : i1 to i32
    %c0_i32_14 = arith.constant 0 : i32
    %19 = arith.cmpi ne, %18, %c0_i32_14 : i32
    scf.if %19 {
      %c0_15 = arith.constant 0 : index
      %c0_16 = arith.constant 0 : index
      %20 = vector.load %arg6[%c0_15, %c0_16] : memref<2x128xf32, #tpu.memory_space<vmem>>, vector<2x128xf32>
      %cst_17 = arith.constant 6.250000e-02 : f32
      %21 = vector.broadcast %cst_17 : f32 to vector<2x128xf32>
      %22 = arith.mulf %20, %21 : vector<2x128xf32>
      %23 = arith.truncf %22 : vector<2x128xf32> to vector<2x128xbf16>
      %c0_18 = arith.constant 0 : index
      %c0_19 = arith.constant 0 : index
      %24 = vector.load %arg5[%c0_18, %c0_19] : memref<2x128xbf16, #tpu.memory_space<vmem>>, vector<2x128xbf16>
      tpu.vector_store %arg5[%c0_18, %c0_19], %23 {strides = array<i32>} : memref<2x128xbf16, #tpu.memory_space<vmem>>, vector<2x128xbf16>,
    } else {
    }
    return
  }
  func.func @transform_0(%arg0: i32, %arg1: i32) -> (i32, i32, i32) {
    %c0_i32 = arith.constant 0 : i32
    %c0_i32_0 = arith.constant 0 : i32
    return %arg0, %arg1, %c0_i32 : i32, i32, i32
  }
  func.func @transform_1(%arg0: i32, %arg1: i32) -> (i32, i32) {
    %c0_i32 = arith.constant 0 : i32
    %c0_i32_0 = arith.constant 0 : i32
    %c0_i32_1 = arith.constant 0 : i32
    return %c0_i32, %c0_i32_0 : i32, i32
  }
  func.func @transform_2(%arg0: i32, %arg1: i32) -> (i32, i32) {
    %c0_i32 = arith.constant 0 : i32
    %c0_i32_0 = arith.constant 0 : i32
    %c0_i32_1 = arith.constant 0 : i32
    return %c0_i32, %c0_i32_0 : i32, i32
  }
  func.func @transform_3(%arg0: i32, %arg1: i32) -> (i32, i32) {
    %c0_i32 = arith.constant 0 : i32
    %c0_i32_0 = arith.constant 0 : i32
    return %arg0, %c0_i32 : i32, i32
  }
}

</mosaic_0001>

<bundles_post_ra>
// kernel: tpu_custom_call.1
= control target key start
LH: loop header
LB: loop body
LE: loop exit
PB: predicated region body
PF: predicated region fallthrough
CT: control target
= control target key end

     0   :  { %8 = vsyncpa [#allocation4], 0  ;;  %s428_s0 = inlined_call_operand.hbm [shape: bf16[2,16,128], index: 0, kind: input, shape index: {}]   ;;  %s429_s1 = inlined_call_operand.hbm [shape: bf16[128,128], index: 1, kind: input, shape index: {}]   ;;  %s430_s2 = inlined_call_operand.vmem [shape: f32[1,128], index: 2, kind: input, shape index: {}]   ;;  %s431_s3 = inlined_call_operand.hbm [shape: bf16[2,128], index: 3, kind: output, shape index: {}]  }
   0x1   :  { %9 = vsyncpa [#allocation7], 0 }
   0x2   :  { %10 = vsyncpa [#allocation5], 0  ;;  %s363_s12 = smov [#allocation3]   ;;  %s291_s16 = scalar_lea.hbm %s428_s0, 256 }
   0x3   :  { %s16_s13 = sshll.u32 %s363_s12, 4  ;;  %p292_p0 = scmp.ne.s32.totalorder %s428_s0, %s291_s16  ;;  %s17_s13 = int_to_ptr.vmem [resolvable:$true] %s16_s13 }
   0x4   :  { %p295_p1 = scmp.lt.u32.totalorder %s291_s16, %s428_s0 }
   0x6   :  { %p297_p2 = pnand %p295_p1, %p292_p0 }
   0x8   :  { %300 = shalt.err (!%p297_p2)
}
   0x9   :  { %s301_s21 = scalar_lea.vmem %s17_s13, 256  ;;  %p306_p4 = scmp.lt.s32.totalorder %s17_s13, %s17_s13 }
   0xa   :  { %p302_p3 = scmp.ne.s32.totalorder %s17_s13, %s301_s21  ;;  %p307_p5 = scmp.lt.s32.totalorder %s301_s21, %s301_s21 }
   0xc   :  { %p308_p6 = por %p307_p5, %p306_p4 }
   0xe   :  { %p309_p7 = pnand %p308_p6, %p302_p3 }
  0x10   :  { %312 = shalt.err (!%p309_p7)
}
  0x11   :  { %s364_s22 = smov 64   ;;  %s365_s23 = smov 4  }
  0x12   :  { %22 = dma.hbm_to_vmem [thread:$0]  %s428_s0, 256, %s17_s13, [#allocation4], %s364_s22, %s364_s22, %s365_s23  }
  0x13   :  { %s366_s26 = smov [#allocation6]   ;;  %s313_s30 = scalar_lea.hbm %s429_s1, 1024 }
  0x14   :  { %s28_s27 = sshll.u32 %s366_s26, 4  ;;  %p314_p8 = scmp.ne.s32.totalorder %s429_s1, %s313_s30  ;;  %s29_s27 = int_to_ptr.vmem [resolvable:$true] %s28_s27 }
  0x15   :  { %p317_p9 = scmp.lt.u32.totalorder %s313_s30, %s429_s1 }
  0x17   :  { %p319_p10 = pnand %p317_p9, %p314_p8 }
  0x19   :  { %322 = shalt.err (!%p319_p10)
}
  0x1a   :  { %s323_s8 = scalar_lea.vmem %s29_s27, 1024  ;;  %p328_p12 = scmp.lt.s32.totalorder %s29_s27, %s29_s27 }
  0x1b   :  { %p324_p11 = scmp.ne.s32.totalorder %s29_s27, %s323_s8  ;;  %p329_p13 = scmp.lt.s32.totalorder %s323_s8, %s323_s8 }
  0x1d   :  { %p330_p0 = por %p329_p13, %p328_p12 }
  0x1f   :  { %p331_p1 = pnand %p330_p0, %p324_p11 }
  0x21   :  { %334 = shalt.err (!%p331_p1)
}
  0x22   :  { %34 = dma.hbm_to_vmem [thread:$0]  %s429_s1, 1024, %s29_s27, [#allocation7], %s364_s22, %s364_s22, %s365_s23  }
  0x23   :  { %357 = dma.done.wait [#allocation4], 256  }
  0x24   :  { %358 = vsyncadd [#allocation4], 4294967040 }
  0x25   :  { %359 = dma.done.wait [#allocation7], 1024  }
  0x26   :  { %360 = vsyncadd [#allocation7], 4294966272  ;;  %v281_v0 = vld [vmem:[#allocation6] sm:$0xff]   ;;  %v282_v1 = vld [vmem:[#allocation6 + $0x8] sm:$0xff]   ;;  %v367_v10 = vmov 0.0   ;;  %vm206_vm0 = vcmask 1041409  }
  0x27   :  { %255 = vmatprep.subr.bf16.mxu0 %v281_v0  ;;  %v283_v2 = vld [vmem:[#allocation6 + $0x10] sm:$0xff]   ;;  %v284_v3 = vld [vmem:[#allocation6 + $0x18] sm:$0xff]   ;;  %v285_v5 = vld [vmem:[#allocation6 + $0x20] sm:$0xff]   ;;  %202 = vst [vmem:[#allocation2] sm:$0x3] %v367_v10 }
  0x28   :  { %256 = vmatpush3.bf16.msra.mxu0 %v281_v0  ;;  %v289_v4 = vld [vmem:[#allocation3] sm:$0xff]   ;;  %v286_v6 = vld [vmem:[#allocation6 + $0x28] sm:$0xff]   ;;  %v288_v8 = vld [vmem:[#allocation6 + $0x38] sm:$0xff]  }
  0x29   :  { %257 = vmatprep.subr.bf16.mxu0 %v282_v1  ;;  %271 = vmatprep.mubr.bf16.mxu0 %v289_v4  ;;  %v287_v7 = vld [vmem:[#allocation6 + $0x30] sm:$0xff]   ;;  %v290_v9 = vld [vmem:[#allocation3 + $0x8] sm:$0xff]   ;;  %v234_v11 = vld [vmem:[%s430_s2] ss:$0 sm:$0xff]  ;;  %s368_s2 = smov [#allocation8]  }
  0x2a   :  { %s224_s11 = sshll.u32 %s368_s2, 4  ;;  %s225_s11 = int_to_ptr.vmem [resolvable:$true] %s224_s11 }
  0x2b   :  { %s335_s12 = scalar_lea.vmem %s225_s11, 16  ;;  %s339_s13 = scalar_lea.vmem %s225_s11, 32 }
  0x2c   :  { %258 = vmatpush3.bf16.msra.mxu0 %v282_v1  ;;  %p336_p2 = scmp.ne.s32.totalorder %s225_s11, %s335_s12  ;;  %p340_p3 = scmp.lt.s32.totalorder %s225_s11, %s225_s11 }
  0x2d   :  { %259 = vmatprep.subr.bf16.mxu0 %v283_v2  ;;  %p341_p4 = scmp.lt.s32.totalorder %s339_s13, %s335_s12 }
  0x2e   :  { %v203_v38 = vld [vmem:[#allocation2] sm:$0x3] }
  0x2f   :  { %p342_p5 = por %p341_p4, %p340_p3 }
  0x30   :  { %260 = vmatpush3.bf16.msra.mxu0 %v283_v2 }
  0x31   :  { %261 = vmatprep.subr.bf16.mxu0 %v284_v3  ;;  %p343_p6 = pnand %p342_p5, %p336_p2 }
  0x34   :  { %262 = vmatpush3.bf16.msra.mxu0 %v284_v3 }
  0x35   :  { %263 = vmatprep.subr.bf16.mxu0 %v285_v5 }
  0x38   :  { %264 = vmatpush3.bf16.msra.mxu0 %v285_v5 }
  0x39   :  { %265 = vmatprep.subr.bf16.mxu0 %v286_v6 }
  0x3c   :  { %266 = vmatpush3.bf16.msra.mxu0 %v286_v6 }
  0x3d   :  { %267 = vmatprep.subr.bf16.mxu0 %v287_v7 }
  0x40   :  { %268 = vmatpush3.bf16.msra.mxu0 %v287_v7 }
  0x41   :  { %269 = vmatprep.subr.bf16.mxu0 %v288_v8 }
  0x44   :  { %270 = vmatpush3.bf16.msra.mxu0 %v288_v8 }
  0x47   :  { %272 = vmatmul.mubr.bf16.vlgmr.msra.gmra.mrb[0].mxu0 %v290_v9 }
 0x11a   :  { %v273_v12 = vpop.f32.mrb[0].mxu0 }
 0x11b   :  { %v174_v13 = vadd.f32 %v273_v12, %v234_v11  ;;  %v165_v14 = vpop.f32.mrb[1].mxu0 }
 0x11c   :  { %v166_v15 = vadd.f32 %v234_v11, %v165_v14  ;;  %v274_v16 = vpop.f32.mrb[2].mxu0 }
 0x11d   :  { %v177_v17 = vadd.f32 %v274_v16, %v234_v11  ;;  %v168_v18 = vpop.f32.mrb[3].mxu0  ;;  %v182_v20 = vmax.f32 %v174_v13, 0.0 }
 0x11e   :  { %v169_v19 = vadd.f32 %v234_v11, %v168_v18  ;;  %v180_v22 = vmax.f32 %v166_v15, 0.0 }
 0x11f   :  { %v183_v21 = vmax.f32 %v177_v17, 0.0 }
 0x120   :  { %v181_v23 = vmax.f32 %v169_v19, 0.0 }
 0x121   :  { %v191_v24 = vadd.f32 %v183_v21, %v182_v20 }
 0x122   :  { %v184_v25 = vadd.f32 %v181_v23, %v180_v22 }
 0x123   :  { %v192_v26 = vrot.slane %v191_v24, 4 }
 0x124   :  { %v185_v27 = vrot.slane %v184_v25, 4 }
 0x125   :  { %v193_v28 = vadd.f32 %v192_v26, %v191_v24 }
 0x126   :  { %v186_v29 = vadd.f32 %v185_v27, %v184_v25 }
 0x127   :  { %v194_v30 = vrot.slane %v193_v28, 2 }
 0x128   :  { %v187_v31 = vrot.slane %v186_v29, 2 }
 0x129   :  { %v195_v32 = vadd.f32 %v194_v30, %v193_v28 }
 0x12a   :  { %v188_v33 = vadd.f32 %v187_v31, %v186_v29 }
 0x12b   :  { %v196_v34 = vrot.slane %v195_v32, 1 }
 0x12c   :  { %v189_v35 = vrot.slane %v188_v33, 1 }
 0x12d   :  { %v197_v36 = vadd.f32 %v196_v34, %v195_v32 }
 0x12e   :  { %v190_v37 = vadd.f32 %v189_v35, %v188_v33 }
 0x130   :  { %v207_v39 = vsel %vm206_vm0, %v197_v36, %v190_v37 }
 0x131   :  { %v209_v40 = vadd.f32 %v207_v39, %v203_v38 }
 0x133   :  { %210 = vst [vmem:[#allocation2] sm:$0x3] %v209_v40 }
 0x13a   :  { %v214_v41 = vld [vmem:[#allocation2] sm:$0x3] }
 0x13b   :  { %v215_v42 = vmul.f32 0.0625, %v214_v41 }
 0x13d   :  { %v216_v43 = vpack.c.bf16 %v215_v42, %v215_v42 }
 0x13f   :  { %217 = vst [vmem:[#allocation8] sm:$0x1] %v216_v43 }
 0x140   :  { %346 = shalt.err (!%p343_p6)
}
 0x141   :  { %s347_s16 = scalar_lea.hbm %s431_s3, 16 }
 0x142   :  { %p348_p7 = scmp.ne.s32.totalorder %s431_s3, %s347_s16  ;;  %p351_p8 = scmp.lt.u32.totalorder %s347_s16, %s431_s3 }
 0x144   :  { %p353_p9 = pnand %p351_p8, %p348_p7 }
 0x146   :  { %356 = shalt.err (!%p353_p9)
}
 0x147   :  { %227 = dma.vmem_to_hbm [thread:$0]  %s225_s11, 16, %s431_s3, [#allocation5]  }
 0x148   :  { %361 = dma.done.wait [#allocation5], 16  }
 0x149   :  { %362 = vsyncadd [#allocation5], 4294967280 }
 0x14a   :  { %231 = vsyncpa [#allocation4], 1 }
 0x14b   :  { %232 = vsyncpa [#allocation7], 1 }
 0x14c   :  { %233 = vsyncpa [#allocation5], 1 }

</bundles_post_ra>
